<compile_context>
chip_gen: v7x
topology: tpu7x:2x2x1
jax: 0.10.0
libtpu: 0.0.40
codegen_flags: <defaults>
</compile_context>

<pallas_src>
import functools

import jax
import jax.numpy as jnp
from jax import lax
from jax.experimental import pallas as pl
from jax.experimental.pallas import tpu as pltpu

EPS = 1e-5


def _round_up(x: int, m: int) -> int:
    return (x + m - 1) // m * m


def _pick_tiles(R: int, HW: int):
    """Row/lane tile sizes for the (N*C, H*W) slab (targets ~2 MiB / x block)."""
    hw_p = _round_up(HW, 128)
    thw = min(hw_p, 2048)                 # lane tile: <= 8 KiB per row
    hw_p = _round_up(hw_p, thw)
    r_p = _round_up(R, 8)
    tr = max(8, min(r_p, ((2 * 1024 * 1024) // (thw * 4)) // 8 * 8))
    r_p = _round_up(r_p, tr)
    return r_p, tr, hw_p, thw


# ----------------------------- kernels ------------------------------------- #

def _row_stats_kernel(x_ref, sum_ref, sumsq_ref):
    """Per-row sum and sum-of-squares, accumulated across lane (hw) tiles."""
    j = pl.program_id(1)

    @pl.when(j == 0)
    def _():
        sum_ref[...] = jnp.zeros_like(sum_ref)
        sumsq_ref[...] = jnp.zeros_like(sumsq_ref)

    x = x_ref[...].astype(jnp.float32)
    sum_ref[...] += jnp.sum(x, axis=1, keepdims=True)
    sumsq_ref[...] += jnp.sum(x * x, axis=1, keepdims=True)


def _norm_relu_pool_kernel(x_ref, scale_ref, shift_ref, psum_ref, *,
                           hw_valid, thw, apply_relu, masked):
    """y = [relu](x*scale + shift); accumulate per-row spatial sum (avg pool)."""
    j = pl.program_id(1)

    @pl.when(j == 0)
    def _():
        psum_ref[...] = jnp.zeros_like(psum_ref)

    x = x_ref[...].astype(jnp.float32)
    y = x * scale_ref[...] + shift_ref[...]        # folded scale/shift: 2 VPU ops
    if apply_relu:
        y = jnp.maximum(y, 0.0)
    if masked:  # only traced when the lane axis was zero-padded
        lane = lax.broadcasted_iota(jnp.int32, y.shape, 1) + j * thw
        y = jnp.where(lane < hw_valid, y, 0.0)
    psum_ref[...] += jnp.sum(y, axis=1, keepdims=True)


def _fc_kernel(x_ref, w_ref, b_ref, o_ref):
    o_ref[...] = (jnp.dot(x_ref[...], w_ref[...],
                          preferred_element_type=jnp.float32)
                  + b_ref[...]).astype(o_ref.dtype)


# ----------------------------- wrapper ------------------------------------- #

def output_layer_forward(x_nchw, gamma, beta, fc_w, fc_b, *,
                         resnet_version=2, eps=EPS):
    """x_nchw: (N,C,H,W); gamma/beta: (C,); fc_w: (K,C); fc_b: (K,) -> (N,K)."""
    N, C, H, W = x_nchw.shape
    HW = H * W
    R = N * C
    # Free reshape (NCHW is contiguous): rows = (n, c), lanes = spatial.
    x_rows = x_nchw.astype(jnp.float32).reshape(R, HW)

    r_p, tr, hw_p, thw = _pick_tiles(R, HW)
    if (r_p, hw_p) != (R, HW):
        # Only for unaligned shapes; zeros are harmless for the sums and are
        # masked out in the pooling pass.
        x_rows = jnp.pad(x_rows, ((0, r_p - R), (0, hw_p - HW)))
    grid = (r_p // tr, hw_p // thw)
    dimsem = ("parallel", "arbitrary")   # rows shard across cores; hw accumulates

    if resnet_version == 2:
        # ---- pass 1: per-(n,c) sum / sumsq (single read of x) ----
        rowsum, rowsumsq = pl.pallas_call(
            _row_stats_kernel,
            out_shape=(jax.ShapeDtypeStruct((r_p, 1), jnp.float32),
                       jax.ShapeDtypeStruct((r_p, 1), jnp.float32)),
            grid_spec=pltpu.PrefetchScalarGridSpec(
                num_scalar_prefetch=0,
                grid=grid,
                in_specs=[pl.BlockSpec((tr, thw), lambda i, j: (i, j))],
                out_specs=(pl.BlockSpec((tr, 1), lambda i, j: (i, 0)),
                           pl.BlockSpec((tr, 1), lambda i, j: (i, 0)))),
            compiler_params=pltpu.CompilerParams(dimension_semantics=dimsem),
        )(x_rows)

        # Tiny per-channel finalize (C values): biased training-mode variance.
        # f32 accumulation; a two-pass scheme could be used for extreme R/means.
        count = jnp.float32(N * HW)
        ch_sum = rowsum[:R, 0].reshape(N, C).sum(axis=0)
        ch_sumsq = rowsumsq[:R, 0].reshape(N, C).sum(axis=0)
        mean = ch_sum / count
        var = jnp.maximum(ch_sumsq / count - mean * mean, 0.0)
        inv_std = lax.rsqrt(var + eps)
        scale_c = gamma.astype(jnp.float32) * inv_std
        shift_c = beta.astype(jnp.float32) - mean * scale_c
    else:
        scale_c = jnp.ones((C,), jnp.float32)
        shift_c = jnp.zeros((C,), jnp.float32)

    # Per-row scale/shift (row r holds channel r % C).
    scale_rows = jnp.tile(scale_c, (N,)).reshape(R, 1)
    shift_rows = jnp.tile(shift_c, (N,)).reshape(R, 1)
    if r_p != R:
        scale_rows = jnp.pad(scale_rows, ((0, r_p - R), (0, 0)))
        shift_rows = jnp.pad(shift_rows, ((0, r_p - R), (0, 0)))

    # ---- pass 2: normalize + ReLU fused with global average pool ----
    pooled_sum = pl.pallas_call(
        functools.partial(_norm_relu_pool_kernel,
                          hw_valid=HW, thw=thw,
                          apply_relu=(resnet_version == 2),
                          masked=(hw_p != HW)),
        out_shape=jax.ShapeDtypeStruct((r_p, 1), jnp.float32),
        grid_spec=pltpu.PrefetchScalarGridSpec(
            num_scalar_prefetch=0,
            grid=grid,
            in_specs=[pl.BlockSpec((tr, thw), lambda i, j: (i, j)),
                      pl.BlockSpec((tr, 1), lambda i, j: (i, 0)),
                      pl.BlockSpec((tr, 1), lambda i, j: (i, 0))],
            out_specs=pl.BlockSpec((tr, 1), lambda i, j: (i, 0))),
        compiler_params=pltpu.CompilerParams(dimension_semantics=dimsem),
    )(x_rows, scale_rows, shift_rows)

    # AdaptiveAvgPool2d((1,1)) + flatten  -> (N, C)
    pooled = (pooled_sum[:R, 0] / jnp.float32(HW)).reshape(N, C)

    # ---- pass 3: Linear(C -> K) as a single-block MXU matmul ----
    K = fc_w.shape[0]
    n_p = _round_up(N, 8)
    c_p = _round_up(C, 128)
    k_p = _round_up(K, 128)
    x_fc = jnp.zeros((n_p, c_p), jnp.float32).at[:N, :C].set(pooled)
    w_fc = jnp.zeros((c_p, k_p), jnp.float32).at[:C, :K].set(
        fc_w.astype(jnp.float32).T)
    b_fc = jnp.zeros((1, k_p), jnp.float32).at[0, :K].set(
        fc_b.astype(jnp.float32))

    logits = pl.pallas_call(
        _fc_kernel,
        out_shape=jax.ShapeDtypeStruct((n_p, k_p), jnp.float32),
        in_specs=[pl.BlockSpec((n_p, c_p), lambda: (0, 0)),
                  pl.BlockSpec((c_p, k_p), lambda: (0, 0)),
                  pl.BlockSpec((1, k_p), lambda: (0, 0))],
        out_specs=pl.BlockSpec((n_p, k_p), lambda: (0, 0)),
    )(x_fc, w_fc, b_fc)

    return logits[:N, :K]


if __name__ == "__main__":
    key = jax.random.PRNGKey(0)
    N, C, H, W = 2, 4, 16, 16
    num_classes = 10
    kx, kw, kb = jax.random.split(key, 3)

    x = jax.random.normal(kx, (N, C, H, W), dtype=jnp.float32)
    # BatchNorm2d default parameters (gamma=1, beta=0).
    gamma = jnp.ones((C,), jnp.float32)
    beta = jnp.zeros((C,), jnp.float32)
    # Deterministic Linear parameters (PyTorch-style uniform init range).
    bound = 1.0 / (C ** 0.5)
    fc_w = jax.random.uniform(kw, (num_classes, C), jnp.float32, -bound, bound)
    fc_b = jax.random.uniform(kb, (num_classes,), jnp.float32, -bound, bound)

    out = output_layer_forward(x, gamma, beta, fc_w, fc_b, resnet_version=2)
    out = jax.block_until_ready(out)

    # Pure-JAX reference: training-mode BN -> ReLU -> global avg pool -> FC.
    mean = jnp.mean(x, axis=(0, 2, 3), keepdims=True)
    var = jnp.mean((x - mean) ** 2, axis=(0, 2, 3), keepdims=True)
    y = jnp.maximum(
        (x - mean) / jnp.sqrt(var + EPS) * gamma.reshape(1, C, 1, 1)
        + beta.reshape(1, C, 1, 1),
        0.0,
    )
    pooled_ref = y.mean(axis=(2, 3))                 # (N, C)
    ref = pooled_ref @ fc_w.T + fc_b                 # (N, num_classes)

    assert out.shape == (N, num_classes)
    assert jnp.allclose(out, ref, atol=1e-4, rtol=1e-4), "mismatch vs reference"
    print("KERNEL_OK")
</pallas_src>

<mosaic_0001>
module attributes {stable_mosaic.version = 11 : i64} {
  func.func @_row_stats_kernel(%arg0: i32, %arg1: i32, %arg2: memref<8x256xf32, #tpu.memory_space<vmem>>, %arg3: memref<8x1xf32, #tpu.memory_space<vmem>>, %arg4: memref<8x1xf32, #tpu.memory_space<vmem>>) attributes {dimension_semantics = [#tpu.dimension_semantics<parallel>, #tpu.dimension_semantics<arbitrary>], iteration_bounds = array<i64: 1, 1>, scalar_prefetch = 0 : i64, scratch_operands = 0 : i64, tpu.core_type = #tpu.core_type<tc>, window_params = [{transform_indices = @transform_0, window_bounds = array<i64: 8, 256>}, {transform_indices = @transform_1, window_bounds = array<i64: 8, 1>}, {transform_indices = @transform_2, window_bounds = array<i64: 8, 1>}]} {
    %c0_i32 = arith.constant 0 : i32
    %0 = arith.cmpi eq, %arg1, %c0_i32 : i32
    %1 = arith.extui %0 : i1 to i32
    %c0_i32_0 = arith.constant 0 : i32
    %2 = arith.cmpi ne, %1, %c0_i32_0 : i32
    scf.if %2 {
      %cst_11 = arith.constant 0.000000e+00 : f32
      %15 = vector.broadcast %cst_11 : f32 to vector<8x1xf32>
      %c0_12 = arith.constant 0 : index
      %c0_13 = arith.constant 0 : index
      %16 = vector.load %arg3[%c0_12, %c0_13] : memref<8x1xf32, #tpu.memory_space<vmem>>, vector<8x1xf32>
      tpu.vector_store %arg3[%c0_12, %c0_13], %15 {strides = array<i32>} : memref<8x1xf32, #tpu.memory_space<vmem>>, vector<8x1xf32>,
      %cst_14 = arith.constant 0.000000e+00 : f32
      %17 = vector.broadcast %cst_14 : f32 to vector<8x1xf32>
      %c0_15 = arith.constant 0 : index
      %c0_16 = arith.constant 0 : index
      %18 = vector.load %arg4[%c0_15, %c0_16] : memref<8x1xf32, #tpu.memory_space<vmem>>, vector<8x1xf32>
      tpu.vector_store %arg4[%c0_15, %c0_16], %17 {strides = array<i32>} : memref<8x1xf32, #tpu.memory_space<vmem>>, vector<8x1xf32>,
    } else {
    }
    %c0 = arith.constant 0 : index
    %c0_1 = arith.constant 0 : index
    %3 = vector.load %arg2[%c0, %c0_1] : memref<8x256xf32, #tpu.memory_space<vmem>>, vector<8x256xf32>
    %c0_2 = arith.constant 0 : index
    %c0_3 = arith.constant 0 : index
    %4 = vector.load %arg3[%c0_2, %c0_3] : memref<8x1xf32, #tpu.memory_space<vmem>>, vector<8x1xf32>
    %cst = arith.constant dense<0.000000e+00> : vector<8xf32>
    %5 = vector.multi_reduction <add>, %3, %cst [1] : vector<8x256xf32> to vector<8xf32>
    %6 = vector.shape_cast %5 : vector<8xf32> to vector<8x1xf32>
    %7 = arith.addf %4, %6 : vector<8x1xf32>
    %c0_4 = arith.constant 0 : index
    %c0_5 = arith.constant 0 : index
    %8 = vector.load %arg3[%c0_4, %c0_5] : memref<8x1xf32, #tpu.memory_space<vmem>>, vector<8x1xf32>
    tpu.vector_store %arg3[%c0_4, %c0_5], %7 {strides = array<i32>} : memref<8x1xf32, #tpu.memory_space<vmem>>, vector<8x1xf32>,
    %c0_6 = arith.constant 0 : index
    %c0_7 = arith.constant 0 : index
    %9 = vector.load %arg4[%c0_6, %c0_7] : memref<8x1xf32, #tpu.memory_space<vmem>>, vector<8x1xf32>
    %10 = arith.mulf %3, %3 : vector<8x256xf32>
    %cst_8 = arith.constant dense<0.000000e+00> : vector<8xf32>
    %11 = vector.multi_reduction <add>, %10, %cst_8 [1] : vector<8x256xf32> to vector<8xf32>
    %12 = vector.shape_cast %11 : vector<8xf32> to vector<8x1xf32>
    %13 = arith.addf %9, %12 : vector<8x1xf32>
    %c0_9 = arith.constant 0 : index
    %c0_10 = arith.constant 0 : index
    %14 = vector.load %arg4[%c0_9, %c0_10] : memref<8x1xf32, #tpu.memory_space<vmem>>, vector<8x1xf32>
    tpu.vector_store %arg4[%c0_9, %c0_10], %13 {strides = array<i32>} : memref<8x1xf32, #tpu.memory_space<vmem>>, vector<8x1xf32>,
    return
  }
  func.func @transform_0(%arg0: i32, %arg1: i32) -> (i32, i32) {
    %c0_i32 = arith.constant 0 : i32
    return %arg0, %arg1 : i32, i32
  }
  func.func @transform_1(%arg0: i32, %arg1: i32) -> (i32, i32) {
    %c0_i32 = arith.constant 0 : i32
    %c0_i32_0 = arith.constant 0 : i32
    return %arg0, %c0_i32 : i32, i32
  }
  func.func @transform_2(%arg0: i32, %arg1: i32) -> (i32, i32) {
    %c0_i32 = arith.constant 0 : i32
    %c0_i32_0 = arith.constant 0 : i32
    return %arg0, %c0_i32 : i32, i32
  }
}

</mosaic_0001>

<bundles_post_ra>
// kernel: tpu_custom_call.1
= control target key start
LH: loop header
LB: loop body
LE: loop exit
PB: predicated region body
PF: predicated region fallthrough
CT: control target
= control target key end

     0   :  { %8 = vsyncpa [#allocation3], 0  ;;  %s81_s9 = smov [#allocation2]   ;;  %s132_s0 = inlined_call_operand.hbm [shape: f32[8,256], index: 0, kind: input, shape index: {}]   ;;  %s133_s1 = inlined_call_operand.vmem [shape: f32[8,1], index: 1, kind: output, shape index: {0}]   ;;  %s134_s2 = inlined_call_operand.vmem [shape: f32[8,1], index: 2, kind: output, shape index: {1}]  }
   0x1   :  { %s15_s10 = sshll.u32 %s81_s9, 4  ;;  %s57_s13 = scalar_lea.hbm %s132_s0, 256  ;;  %s16_s10 = int_to_ptr.vmem [resolvable:$true] %s15_s10 }
   0x2   :  { %p58_p0 = scmp.ne.s32.totalorder %s132_s0, %s57_s13  ;;  %p61_p1 = scmp.lt.u32.totalorder %s57_s13, %s132_s0 }
   0x4   :  { %p63_p2 = pnand %p61_p1, %p58_p0 }
   0x6   :  { %66 = shalt.err (!%p63_p2)
}
   0x7   :  { %s67_s18 = scalar_lea.vmem %s16_s10, 256  ;;  %p72_p4 = scmp.lt.s32.totalorder %s16_s10, %s16_s10 }
   0x8   :  { %p68_p3 = scmp.ne.s32.totalorder %s16_s10, %s67_s18  ;;  %p73_p5 = scmp.lt.s32.totalorder %s67_s18, %s67_s18 }
   0xa   :  { %p74_p6 = por %p73_p5, %p72_p4 }
   0xc   :  { %p75_p7 = pnand %p74_p6, %p68_p3 }
   0xe   :  { %78 = shalt.err (!%p75_p7)
}
   0xf   :  { %18 = dma.hbm_to_vmem [thread:$0]  %s132_s0, 256, %s16_s10, [#allocation3]  }
  0x10   :  { %79 = dma.done.wait [#allocation3], 256  }
  0x11   :  { %80 = vsyncadd [#allocation3], 4294967040  ;;  %vm26_vm0 = vcmask 7168   ;;  %v82_v0 = vmov 0.0   ;;  %v29_v1 = vld [vmem:[#allocation2] sm:$0xff]  ;;  %v30_v2 = vld [vmem:[#allocation2 + $0x8] sm:$0xff] }
  0x12   :  { %27 = vst.msk [vmem:[%s133_s1] sm:$0xff] %vm26_vm0, %v82_v0  ;;  %28 = vst.msk [vmem:[%s134_s2] sm:$0xff] %vm26_vm0, %v82_v0  ;;  %v32_v3 = vadd.f32 %v30_v2, %v29_v1  ;;  %v39_v4 = vmul.f32 %v29_v1, %v29_v1  ;;  %v40_v5 = vmul.f32 %v30_v2, %v30_v2 }
  0x14   :  { %33 = vadd.xlane.f32.xlu0 %v32_v3  ;;  %v41_v6 = vadd.f32 %v40_v5, %v39_v4 }
  0x18   :  { %42 = vadd.xlane.f32.xlu0 %v41_v6 }
  0x19   :  { %v31_v7 = vld [vmem:[%s133_s1] sm:$0xff] }
  0x1a   :  { %v38_v10 = vld [vmem:[%s134_s2] sm:$0xff] }
  0xa1   :  { %v34_v8 = vpop.xlane.xlu0 %33 }
  0xa2   :  { %v35_v9 = vadd.f32 %v34_v8, %v31_v7 }
  0xa4   :  { %37 = vst.msk [vmem:[%s133_s1] sm:$0xff] %vm26_vm0, %v35_v9 }
  0xa5   :  { %v43_v11 = vpop.xlane.xlu0 %42 }
  0xa6   :  { %v44_v12 = vadd.f32 %v43_v11, %v38_v10 }
  0xa8   :  { %45 = vst.msk [vmem:[%s134_s2] sm:$0xff] %vm26_vm0, %v44_v12 }
  0xa9   :  { %54 = vsyncpa [#allocation3], 1 }

</bundles_post_ra>
